<compile_context>
chip_gen: v5e
topology: v5e:2x2
jax: 0.10.0
libtpu: 0.0.40
codegen_flags: <defaults>
</compile_context>

<pallas_src>
import math

import jax
import jax.numpy as jnp
from jax import lax
from jax.experimental import pallas as pl
from jax.experimental.pallas import tpu as pltpu

HIDDEN = 256
OUT_PAD = 128  # fc3 output lanes padded to one full vreg lane width


def _round_up(n, m):
    return ((n + m - 1) // m) * m


def _gelu_exact(x):
    # torch.nn.GELU() default = exact erf formulation
    return 0.5 * x * (1.0 + lax.erf(x * (1.0 / math.sqrt(2.0))))


def critic_kernel(x_ref, u_ref, w1x_ref, w1u_ref, b1_ref, w2_ref, b2_ref,
                  w3_ref, b3_ref, q_ref):
    # bf16 operands on the MXU, f32 accumulation; elementwise math stays f32.
    xb = x_ref[...].astype(jnp.bfloat16)
    ub = u_ref[...].astype(jnp.bfloat16)

    # fc1 on concat([x, u]) == x @ W1[:n_x] + u @ W1[n_x:]  (no lane concat in-kernel)
    h1 = (jnp.dot(xb, w1x_ref[...], preferred_element_type=jnp.float32)
          + jnp.dot(ub, w1u_ref[...], preferred_element_type=jnp.float32)
          + b1_ref[...])
    h1 = _gelu_exact(h1)

    h2 = (jnp.dot(h1.astype(jnp.bfloat16), w2_ref[...],
                  preferred_element_type=jnp.float32) + b2_ref[...])
    h2 = _gelu_exact(h2)

    # fc3 padded to 128 lanes: column 0 is the real Q head, rest is zero weight.
    q = (jnp.dot(h2.astype(jnp.bfloat16), w3_ref[...],
                 preferred_element_type=jnp.float32) + b3_ref[...])
    q_ref[...] = q


def critic_forward(x, u, kparams, *, batch_tile=256):
    """x: [B, n_x] f32, u: [B, n_u] f32 -> Q: [B, 1] f32."""
    w1x, w1u, b1, w2, b2, w3p, b3p = kparams
    B, n_x = x.shape
    n_u = u.shape[1]

    if B <= batch_tile:
        tb = _round_up(B, 8)           # sublane-align the single tile
        b_pad = tb
        n_tiles = 1
    else:
        tb = batch_tile
        b_pad = _round_up(B, tb)
        n_tiles = b_pad // tb

    if b_pad != B:
        pad = b_pad - B
        x = jnp.pad(x, ((0, pad), (0, 0)))
        u = jnp.pad(u, ((0, pad), (0, 0)))

    out_shape = jax.ShapeDtypeStruct((b_pad, OUT_PAD), jnp.float32)
    weights = (w1x, w1u, b1, w2, b2, w3p, b3p)

    if n_tiles == 1:
        # Single tile: grid-less call, whole arrays resident in VMEM.
        vmem = pl.BlockSpec(memory_space=pltpu.MemorySpace.VMEM)
        q_pad = pl.pallas_call(
            critic_kernel,
            out_shape=out_shape,
            in_specs=[vmem] * 9,
            out_specs=vmem,
        )(x, u, *weights)
    else:
        # Batch-tiled path: 'parallel' grid axis (megacore-shardable on v7x).
        def row_spec(cols):
            return pl.BlockSpec((tb, cols), lambda i: (i, 0))

        def full_spec(shape):
            return pl.BlockSpec(shape, lambda i: (0, 0))  # fetched once (constant block)

        q_pad = pl.pallas_call(
            critic_kernel,
            out_shape=out_shape,
            grid=(n_tiles,),
            in_specs=[
                row_spec(n_x), row_spec(n_u),
                full_spec(w1x.shape), full_spec(w1u.shape), full_spec(b1.shape),
                full_spec(w2.shape), full_spec(b2.shape),
                full_spec(w3p.shape), full_spec(b3p.shape),
            ],
            out_specs=pl.BlockSpec((tb, OUT_PAD), lambda i: (i, 0)),
            compiler_params=pltpu.CompilerParams(
                dimension_semantics=("parallel",)),
        )(x, u, *weights)

    return q_pad[:B, :1]


def init_params(key, n_x, n_u, hidden=HIDDEN):
    """torch.nn.Linear default init: U(-1/sqrt(fan_in), 1/sqrt(fan_in)) for W and b."""
    ks = jax.random.split(key, 6)

    def linear(kw, kb, fan_in, fan_out):
        bound = 1.0 / math.sqrt(fan_in)
        w = jax.random.uniform(kw, (fan_in, fan_out), jnp.float32, -bound, bound)
        b = jax.random.uniform(kb, (1, fan_out), jnp.float32, -bound, bound)
        return w, b

    w1, b1 = linear(ks[0], ks[1], n_x + n_u, hidden)
    w2, b2 = linear(ks[2], ks[3], hidden, hidden)
    w3, b3 = linear(ks[4], ks[5], hidden, 1)
    return (w1, b1, w2, b2, w3, b3)


def prepare_params(params, n_x):
    """Convert torch-layout params into the kernel layout (split fc1, pad fc3, bf16)."""
    w1, b1, w2, b2, w3, b3 = params
    w1x = w1[:n_x].astype(jnp.bfloat16)
    w1u = w1[n_x:].astype(jnp.bfloat16)
    hidden = w3.shape[0]
    w3p = jnp.zeros((hidden, OUT_PAD), jnp.float32).at[:, :1].set(w3).astype(jnp.bfloat16)
    b3p = jnp.zeros((1, OUT_PAD), jnp.float32).at[:, :1].set(b3)
    return (w1x, w1u, b1, w2.astype(jnp.bfloat16), b2, w3p, b3p)


def reference_forward(x, u, params):
    """Pure-JAX f32 reference matching the torch forward exactly."""
    w1, b1, w2, b2, w3, b3 = params
    f = jnp.concatenate([x, u], axis=-1)
    f = _gelu_exact(f @ w1 + b1)
    f = _gelu_exact(f @ w2 + b2)
    return f @ w3 + b3


if __name__ == "__main__":
    # Ant-like but small: obs dim 27, action dim 8, batch 8.
    B, N_X, N_U = 8, 27, 8

    key = jax.random.PRNGKey(0)
    kx, ku, kp = jax.random.split(key, 3)
    x = jax.random.normal(kx, (B, N_X), dtype=jnp.float32)
    u = jax.random.normal(ku, (B, N_U), dtype=jnp.float32)

    raw_params = init_params(kp, N_X, N_U)
    kparams = prepare_params(raw_params, N_X)

    # Single-tile (grid-less) path.
    q = critic_forward(x, u, kparams)
    jax.block_until_ready(q)
    assert q.shape == (B, 1)
    assert bool(jnp.all(jnp.isfinite(q)))
    q_ref = reference_forward(x, u, raw_params)
    assert float(jnp.max(jnp.abs(q - q_ref))) < 5e-2  # bf16-weight tolerance

    # Batch-tiled 'parallel' grid path (small tile just to exercise the code path).
    B2 = 48
    x2 = jax.random.normal(kx, (B2, N_X), dtype=jnp.float32)
    u2 = jax.random.normal(ku, (B2, N_U), dtype=jnp.float32)
    q2 = critic_forward(x2, u2, kparams, batch_tile=16)
    jax.block_until_ready(q2)
    assert q2.shape == (B2, 1)
    q2_ref = reference_forward(x2, u2, raw_params)
    assert float(jnp.max(jnp.abs(q2 - q2_ref))) < 5e-2

    print("KERNEL_OK")
</pallas_src>

<mosaic_0001>
module attributes {stable_mosaic.version = 11 : i64} {
  func.func @critic_kernel(%arg0: memref<8x27xf32, #tpu.memory_space<vmem>>, %arg1: memref<8x8xf32, #tpu.memory_space<vmem>>, %arg2: memref<27x256xbf16, #tpu.memory_space<vmem>>, %arg3: memref<8x256xbf16, #tpu.memory_space<vmem>>, %arg4: memref<1x256xf32, #tpu.memory_space<vmem>>, %arg5: memref<256x256xbf16, #tpu.memory_space<vmem>>, %arg6: memref<1x256xf32, #tpu.memory_space<vmem>>, %arg7: memref<256x128xbf16, #tpu.memory_space<vmem>>, %arg8: memref<1x128xf32, #tpu.memory_space<vmem>>, %arg9: memref<8x128xf32, #tpu.memory_space<vmem>>) attributes {dimension_semantics = [], scalar_prefetch = 0 : i64, scratch_operands = 0 : i64, tpu.core_type = #tpu.core_type<tc>} {
    %c0 = arith.constant 0 : index
    %c0_0 = arith.constant 0 : index
    %0 = vector.load %arg0[%c0, %c0_0] : memref<8x27xf32, #tpu.memory_space<vmem>>, vector<8x27xf32>
    %1 = arith.truncf %0 : vector<8x27xf32> to vector<8x27xbf16>
    %c0_1 = arith.constant 0 : index
    %c0_2 = arith.constant 0 : index
    %2 = vector.load %arg1[%c0_1, %c0_2] : memref<8x8xf32, #tpu.memory_space<vmem>>, vector<8x8xf32>
    %3 = arith.truncf %2 : vector<8x8xf32> to vector<8x8xbf16>
    %c0_3 = arith.constant 0 : index
    %c0_4 = arith.constant 0 : index
    %4 = vector.load %arg2[%c0_3, %c0_4] : memref<27x256xbf16, #tpu.memory_space<vmem>>, vector<27x256xbf16>
    %cst = arith.constant dense<0.000000e+00> : vector<8x256xf32>
    %5 = tpu.matmul %1, %4, %cst {dimension_numbers = #tpu.dot_dimension_numbers<[1], [0], [0], [1], [0, 0, 1, 1], [], []>} : vector<8x27xbf16>, vector<27x256xbf16>, vector<8x256xf32> -> vector<8x256xf32>
    %c0_5 = arith.constant 0 : index
    %c0_6 = arith.constant 0 : index
    %6 = vector.load %arg3[%c0_5, %c0_6] : memref<8x256xbf16, #tpu.memory_space<vmem>>, vector<8x256xbf16>
    %cst_7 = arith.constant dense<0.000000e+00> : vector<8x256xf32>
    %7 = tpu.matmul %3, %6, %cst_7 {dimension_numbers = #tpu.dot_dimension_numbers<[1], [0], [0], [1], [0, 0, 1, 1], [], []>} : vector<8x8xbf16>, vector<8x256xbf16>, vector<8x256xf32> -> vector<8x256xf32>
    %8 = arith.addf %5, %7 : vector<8x256xf32>
    %c0_8 = arith.constant 0 : index
    %c0_9 = arith.constant 0 : index
    %9 = vector.load %arg4[%c0_8, %c0_9] : memref<1x256xf32, #tpu.memory_space<vmem>>, vector<1x256xf32>
    %10 = vector.broadcast %9 : vector<1x256xf32> to vector<8x256xf32>
    %11 = arith.addf %8, %10 : vector<8x256xf32>
    %cst_10 = arith.constant 5.000000e-01 : f32
    %12 = vector.broadcast %cst_10 : f32 to vector<8x256xf32>
    %13 = arith.mulf %12, %11 : vector<8x256xf32>
    %cst_11 = arith.constant 0.707106769 : f32
    %14 = vector.broadcast %cst_11 : f32 to vector<8x256xf32>
    %15 = arith.mulf %11, %14 : vector<8x256xf32>
    %16 = math.erf %15 : vector<8x256xf32>
    %cst_12 = arith.constant 1.000000e+00 : f32
    %17 = vector.broadcast %cst_12 : f32 to vector<8x256xf32>
    %18 = arith.addf %17, %16 : vector<8x256xf32>
    %19 = arith.mulf %13, %18 : vector<8x256xf32>
    %20 = arith.truncf %19 : vector<8x256xf32> to vector<8x256xbf16>
    %c0_13 = arith.constant 0 : index
    %c0_14 = arith.constant 0 : index
    %21 = vector.load %arg5[%c0_13, %c0_14] : memref<256x256xbf16, #tpu.memory_space<vmem>>, vector<256x256xbf16>
    %cst_15 = arith.constant dense<0.000000e+00> : vector<8x256xf32>
    %22 = tpu.matmul %20, %21, %cst_15 {dimension_numbers = #tpu.dot_dimension_numbers<[1], [0], [0], [1], [0, 0, 1, 1], [], []>} : vector<8x256xbf16>, vector<256x256xbf16>, vector<8x256xf32> -> vector<8x256xf32>
    %c0_16 = arith.constant 0 : index
    %c0_17 = arith.constant 0 : index
    %23 = vector.load %arg6[%c0_16, %c0_17] : memref<1x256xf32, #tpu.memory_space<vmem>>, vector<1x256xf32>
    %24 = vector.broadcast %23 : vector<1x256xf32> to vector<8x256xf32>
    %25 = arith.addf %22, %24 : vector<8x256xf32>
    %cst_18 = arith.constant 5.000000e-01 : f32
    %26 = vector.broadcast %cst_18 : f32 to vector<8x256xf32>
    %27 = arith.mulf %26, %25 : vector<8x256xf32>
    %cst_19 = arith.constant 0.707106769 : f32
    %28 = vector.broadcast %cst_19 : f32 to vector<8x256xf32>
    %29 = arith.mulf %25, %28 : vector<8x256xf32>
    %30 = math.erf %29 : vector<8x256xf32>
    %cst_20 = arith.constant 1.000000e+00 : f32
    %31 = vector.broadcast %cst_20 : f32 to vector<8x256xf32>
    %32 = arith.addf %31, %30 : vector<8x256xf32>
    %33 = arith.mulf %27, %32 : vector<8x256xf32>
    %34 = arith.truncf %33 : vector<8x256xf32> to vector<8x256xbf16>
    %c0_21 = arith.constant 0 : index
    %c0_22 = arith.constant 0 : index
    %35 = vector.load %arg7[%c0_21, %c0_22] : memref<256x128xbf16, #tpu.memory_space<vmem>>, vector<256x128xbf16>
    %cst_23 = arith.constant dense<0.000000e+00> : vector<8x128xf32>
    %36 = tpu.matmul %34, %35, %cst_23 {dimension_numbers = #tpu.dot_dimension_numbers<[1], [0], [0], [1], [0, 0, 1, 1], [], []>} : vector<8x256xbf16>, vector<256x128xbf16>, vector<8x128xf32> -> vector<8x128xf32>
    %c0_24 = arith.constant 0 : index
    %c0_25 = arith.constant 0 : index
    %37 = vector.load %arg8[%c0_24, %c0_25] : memref<1x128xf32, #tpu.memory_space<vmem>>, vector<1x128xf32>
    %38 = vector.broadcast %37 : vector<1x128xf32> to vector<8x128xf32>
    %39 = arith.addf %36, %38 : vector<8x128xf32>
    %c0_26 = arith.constant 0 : index
    %c0_27 = arith.constant 0 : index
    %40 = vector.load %arg9[%c0_26, %c0_27] : memref<8x128xf32, #tpu.memory_space<vmem>>, vector<8x128xf32>
    tpu.vector_store %arg9[%c0_26, %c0_27], %39 {strides = array<i32>} : memref<8x128xf32, #tpu.memory_space<vmem>>, vector<8x128xf32>,
    return
  }
}

</mosaic_0001>

<bundles_post_ra>
// kernel: tpu_custom_call.1
= control target key start
LH: loop header
LB: loop body
LE: loop exit
PB: predicated region body
PF: predicated region fallthrough
CT: control target
= control target key end

     0   :  { %14 = vsyncpa [#allocation3], 0  ;;  %s1491_s0 = inlined_call_operand.hbm [shape: f32[8,27], index: 0, kind: input, shape index: {}]   ;;  %s1492_s1 = inlined_call_operand.hbm [shape: f32[8,8], index: 1, kind: input, shape index: {}]   ;;  %s1493_s2 = inlined_call_operand.hbm [shape: bf16[27,256], index: 2, kind: input, shape index: {}]   ;;  %s1494_s3 = inlined_call_operand.hbm [shape: bf16[8,256], index: 3, kind: input, shape index: {}]   ;;  %s1495_s4 = inlined_call_operand.vmem [shape: f32[1,256], index: 4, kind: input, shape index: {}]   ;;  %s1496_s5 = inlined_call_operand.hbm [shape: bf16[256,256], index: 5, kind: input, shape index: {}]   ;;  %s1497_s6 = inlined_call_operand.vmem [shape: f32[1,256], index: 6, kind: input, shape index: {}]   ;;  %s1498_s7 = inlined_call_operand.hbm [shape: bf16[256,128], index: 7, kind: input, shape index: {}]   ;;  %s1499_s8 = inlined_call_operand.vmem [shape: f32[1,128], index: 8, kind: input, shape index: {}]   ;;  %s1500_s9 = inlined_call_operand.hbm [shape: f32[8,128], index: 9, kind: output, shape index: {}]  }
   0x1   :  { %15 = vsyncpa [#allocation6], 0 }
   0x2   :  { %16 = vsyncpa [#allocation9], 0 }
   0x3   :  { %17 = vsyncpa [#allocation12], 0  ;;  %s35_s11 = sshll.u32 %s1492_s1, 4  ;;  %s36_s11 = int_to_ptr.hbm [resolvable:$true] %s35_s11 }
   0x4   :  { %18 = vsyncpa [#allocation4], 0  ;;  %s1315_s12 = smov [#allocation5]   ;;  %s59_s16 = sshll.u32 %s1494_s3, 4  ;;  %s60_s16 = int_to_ptr.hbm [resolvable:$true] %s59_s16 }
   0x5   :  { %s37_s13 = sshll.u32 %s1315_s12, 4  ;;  %s1316_s17 = smov [#allocation8]   ;;  %s38_s13 = int_to_ptr.vmem [resolvable:$true] %s37_s13 }
   0x6   :  { %40 = dma.hbm_to_vmem [thread:$0]  %s36_s11, 128, %s38_s13, [#allocation6]  }
   0x7   :  { %s61_s18 = sshll.u32 %s1316_s17, 4  ;;  %s24_s21 = sshll.u32 %s1491_s0, 4  ;;  %s62_s18 = int_to_ptr.vmem [resolvable:$true] %s61_s18  ;;  %s25_s21 = int_to_ptr.hbm [resolvable:$true] %s24_s21 }
   0x8   :  { %64 = dma.hbm_to_vmem [thread:$0]  %s60_s16, 128, %s62_s18, [#allocation9]  }
   0x9   :  { %s45_s23 = sshll.u32 %s1493_s2, 4  ;;  %s1317_s24 = smov [#allocation2]   ;;  %s46_s23 = int_to_ptr.hbm [resolvable:$true] %s45_s23 }
   0xa   :  { %s26_s25 = sshll.u32 %s1317_s24, 4  ;;  %s1318_s3 = smov [#allocation7]   ;;  %s27_s25 = int_to_ptr.vmem [resolvable:$true] %s26_s25 }
   0xb   :  { %29 = dma.hbm_to_vmem [thread:$0]  %s25_s21, 128, %s27_s25, [#allocation3]  }
   0xc   :  { %s47_s26 = sshll.u32 %s1318_s3, 4  ;;  %s1319_s27 = smov 128   ;;  %s48_s26 = int_to_ptr.vmem [resolvable:$true] %s47_s26 }
   0xd   :  { %s1320_s28 = smov 8   ;;  %s71_s30 = sshll.u32 %s1496_s5, 4  ;;  %s72_s30 = int_to_ptr.hbm [resolvable:$true] %s71_s30 }
   0xe   :  { %53 = dma.hbm_to_vmem [thread:$0]  %s46_s23, 512, %s48_s26, [#allocation6], %s1319_s27, %s1319_s27, %s1320_s28  }
   0xf   :  { %s1321_s10 = smov [#allocation10]   ;;  %s86_s13 = sshll.u32 %s1498_s7, 4  ;;  %s87_s13 = int_to_ptr.hbm [resolvable:$true] %s86_s13 }
  0x10   :  { %s73_s11 = sshll.u32 %s1321_s10, 4  ;;  %s1322_s14 = smov [#allocation11]   ;;  %s74_s11 = int_to_ptr.vmem [resolvable:$true] %s73_s11 }
  0x11   :  { %79 = dma.hbm_to_vmem [thread:$0]  %s72_s30, 4096, %s74_s11, [#allocation9], %s1319_s27, %s1319_s27, %s1320_s28  }
  0x12   :  { %s88_s15 = sshll.u32 %s1322_s14, 4  ;;  %s1323_s16 = smov 64   ;;  %s89_s15 = int_to_ptr.vmem [resolvable:$true] %s88_s15 }
  0x13   :  { %s1324_s17 = smov 4  }
  0x14   :  { %94 = dma.hbm_to_vmem [thread:$0]  %s87_s13, 2048, %s89_s15, [#allocation12], %s1323_s16, %s1323_s16, %s1324_s17  }
  0x15   :  { %1305 = dma.done.wait [#allocation3], 128  }
  0x16   :  { %1306 = vsyncadd [#allocation3], 4294967168 }
  0x17   :  { %1307 = dma.done.wait [#allocation6], 640  }
  0x18   :  { %1308 = vsyncadd [#allocation6], 4294966656 }
  0x19   :  { %1309 = dma.done.wait [#allocation9], 4224  }
  0x1a   :  { %1310 = vsyncadd [#allocation9], 4294963072 }
  0x1b   :  { %1311 = dma.done.wait [#allocation12], 2048  }
  0x1c   :  { %1312 = vsyncadd [#allocation12], 4294965248  ;;  %vm195_vm0 = vcmask 1044480   ;;  %vm196_vm1 = vcmask 1045504   ;;  %v1325_v0 = vmov 65535   ;;  %v130_v2 = vld [vmem:[#allocation8] sm:$0xff] }
  0x1d   :  { %v197_v1 = vsel %vm195_vm0, 4294967295, %v1325_v0  ;;  %v860_v3 = vld [vmem:[#allocation7 + $0x10] sm:$0xf]  ;;  %v132_v5 = vunpack.c.l.b16 %v130_v2  ;;  %v133_v6 = vunpack.c.h.b16 %v130_v2  ;;  %v1067_v7 = vld [vmem:[#allocation7 + $0x14] sm:$0x30]  ;;  %vm140_vm2 = vcmask 1043456  }
  0x1e   :  { %v198_v4 = vsel %vm196_vm1, %v197_v1, 0  ;;  %v1066_v8 = vld [vmem:[#allocation7 + $0x14] sm:$0xf]  ;;  %v862_v9 = vld [vmem:[#allocation7 + $0x18] sm:$0x30]  ;;  %v861_v11 = vor.u32 %v1067_v7, %v860_v3  ;;  %vm136_vm3 = vcmask 64512  }
  0x1f   :  { %v124_v10 = vld [vmem:[#allocation5] sm:$0xff]  ;;  %v865_v12 = vor.u32 %v1066_v8, %v862_v9  ;;  %v134_v13 = vpack.c.b16 %v132_v5, %v132_v5  ;;  %v135_v14 = vpack.c.b16 %v133_v6, %v133_v6  ;;  %v852_v15 = vld [vmem:[#allocation7] sm:$0xf]  ;;  %v1065_v18 = vld [vmem:[#allocation7 + $0x4] sm:$0xf0]  ;;  %vm191_vm4 = vcmask 220160  }
  0x20   :  { %v200_v16 = vand.u32 %v861_v11, %v198_v4  ;;  %v1064_v19 = vld [vmem:[#allocation7 + $0x4] sm:$0xf]  ;;  %v854_v20 = vld [vmem:[#allocation7 + $0x8] sm:$0xf0]  ;;  %v125_v23 = vpack.c.bf16 %v124_v10, %v124_v10  ;;  %v853_v24 = vor.u32 %v1065_v18, %v852_v15  ;;  %v122_v26 = vld [vmem:[#allocation2] sm:$0xff]  ;;  %s1326_s20 = smov [#allocation13]  }
  0x21   :  { %v203_v17 = vand.u32 %v865_v12, %v198_v4  ;;  %v142_v21 = vsel %vm140_vm2, %v134_v13, 0  ;;  %v145_v22 = vsel %vm140_vm2, %v135_v14, 0  ;;  %v857_v25 = vor.u32 %v1064_v19, %v854_v20  ;;  %v928_v32 = vld [vmem:[#allocation10 + $0x70] sm:$0xf]  ;;  %v1083_v33 = vld [vmem:[#allocation10 + $0x74] sm:$0xf0] }
  0x22   :  { %154 = vmatpush.bf16.msra.mxu2 %v142_v21  ;;  %167 = vmatpush.bf16.msra.mxu3 %v145_v22  ;;  %v123_v27 = vpack.c.bf16 %v122_v26, %v122_v26  ;;  %v992_v34 = vld [vmem:[#allocation10 + $0xf0] sm:$0xf]  ;;  %v929_v35 = vor.u32 %v1083_v33, %v928_v32  ;;  %v1099_v36 = vld [vmem:[#allocation10 + $0xf4] sm:$0xf0]  ;;  %v1082_v37 = vld [vmem:[#allocation10 + $0x74] sm:$0xf] }
  0x23   :  { %v930_v38 = vld [vmem:[#allocation10 + $0x78] sm:$0xf0]  ;;  %v993_v39 = vor.u32 %v1099_v36, %v992_v34  ;;  %v1098_v41 = vld [vmem:[#allocation10 + $0xf4] sm:$0xf]  ;;  %v231_v43 = vld [vmem:[%s1495_s4] sm:$0x3] }
  0x24   :  { %v933_v40 = vor.u32 %v1082_v37, %v930_v38  ;;  %v994_v42 = vld [vmem:[#allocation10 + $0xf8] sm:$0xf0]  ;;  %527 = vmatpush.bf16.msra.mxu0 %v929_v35  ;;  %v920_v45 = vld [vmem:[#allocation10 + $0x60] sm:$0xf]  ;;  %v1081_v46 = vld [vmem:[#allocation10 + $0x64] sm:$0xf0] }
  0x25   :  { %848 = vmatmul.msk.bf16.vlgmr.msra.gmra.mxu2 %vm136_vm3, %v125_v23  ;;  %849 = vmatmul.msk.bf16.vlgmr.msra.gmra.mxu3 %vm136_vm3, %v125_v23  ;;  %v997_v44 = vor.u32 %v1098_v41, %v994_v42  ;;  %v984_v47 = vld [vmem:[#allocation10 + $0xe0] sm:$0xf]  ;;  %v921_v48 = vor.u32 %v1081_v46, %v920_v45  ;;  %v1097_v49 = vld [vmem:[#allocation10 + $0xe4] sm:$0xf0]  ;;  %v1080_v50 = vld [vmem:[#allocation10 + $0x64] sm:$0xf] }
  0x26   :  { %211 = vmatpush.bf16.msrb.mxu2 %v200_v16  ;;  %224 = vmatpush.bf16.msrb.mxu3 %v203_v17  ;;  %v922_v51 = vld [vmem:[#allocation10 + $0x68] sm:$0xf0]  ;;  %v233_v52 = vperm.slane %v231_v43, 0  ;;  %v234_v53 = vperm.slane %v231_v43, 1  ;;  %v985_v54 = vor.u32 %v1097_v49, %v984_v47  ;;  %v1096_v56 = vld [vmem:[#allocation10 + $0xe4] sm:$0xf] }
  0x27   :  { %540 = vmatpush.bf16.msra.mxu1 %v993_v39  ;;  %v925_v55 = vor.u32 %v1080_v50, %v922_v51  ;;  %v986_v57 = vld [vmem:[#allocation10 + $0xe8] sm:$0xf0]  ;;  %v912_v59 = vld [vmem:[#allocation10 + $0x50] sm:$0xf]  ;;  %v1079_v60 = vld [vmem:[#allocation10 + $0x54] sm:$0xf0] }
  0x28   :  { %528 = vmatpush.bf16.msra.mxu0 %v921_v48  ;;  %v989_v58 = vor.u32 %v1096_v56, %v986_v57  ;;  %v976_v61 = vld [vmem:[#allocation10 + $0xd0] sm:$0xf]  ;;  %v913_v0 = vor.u32 %v1079_v60, %v912_v59  ;;  %v1095_v1 = vld [vmem:[#allocation10 + $0xd4] sm:$0xf0]  ;;  %v1078_v2 = vld [vmem:[#allocation10 + $0x54] sm:$0xf] }
  0x29   :  { %v914_v3 = vld [vmem:[#allocation10 + $0x58] sm:$0xf0]  ;;  %v977_v6 = vor.u32 %v1095_v1, %v976_v61  ;;  %v1094_v8 = vld [vmem:[#allocation10 + $0xd4] sm:$0xf]  ;;  %v904_v10 = vld [vmem:[#allocation10 + $0x40] sm:$0xf] }
  0x2a   :  { %212 = vmatpush.bf16.msrb.mxu2 %v853_v24  ;;  %225 = vmatpush.bf16.msrb.mxu3 %v857_v25  ;;  %v917_v7 = vor.u32 %v1078_v2, %v914_v3  ;;  %v978_v9 = vld [vmem:[#allocation10 + $0xd8] sm:$0xf0]  ;;  %v1077_v12 = vld [vmem:[#allocation10 + $0x44] sm:$0xf0]  ;;  %v968_v13 = vld [vmem:[#allocation10 + $0xc0] sm:$0xf] }
  0x2b   :  { %541 = vmatpush.bf16.msra.mxu1 %v985_v54  ;;  %v981_v11 = vor.u32 %v1094_v8, %v978_v9  ;;  %v1093_v14 = vld [vmem:[#allocation10 + $0xc4] sm:$0xf0]  ;;  %v905_v17 = vor.u32 %v1077_v12, %v904_v10  ;;  %v1076_v18 = vld [vmem:[#allocation10 + $0x44] sm:$0xf]  ;;  %v906_v19 = vld [vmem:[#allocation10 + $0x48] sm:$0xf0] }
  0x2c   :  { %529 = vmatpush.bf16.msra.mxu0 %v913_v0  ;;  %v1092_v20 = vld [vmem:[#allocation10 + $0xc4] sm:$0xf]  ;;  %v969_v21 = vor.u32 %v1093_v14, %v968_v13  ;;  %v909_v22 = vor.u32 %v1076_v18, %v906_v19  ;;  %v970_v23 = vld [vmem:[#allocation10 + $0xc8] sm:$0xf0]  ;;  %v896_v24 = vld [vmem:[#allocation10 + $0x30] sm:$0xf] }
  0x2d   :  { %v1075_v25 = vld [vmem:[#allocation10 + $0x34] sm:$0xf0]  ;;  %v898_v32 = vld [vmem:[#allocation10 + $0x38] sm:$0xf0]  ;;  %v1090_v36 = vld [vmem:[#allocation10 + $0xb4] sm:$0xf] }
  0x2e   :  { %553 = vmatpush.bf16.msra.mxu2 %v933_v40  ;;  %566 = vmatpush.bf16.msra.mxu3 %v997_v44  ;;  %v897_v35 = vor.u32 %v1075_v25, %v896_v24  ;;  %v962_v37 = vld [vmem:[#allocation10 + $0xb8] sm:$0xf0]  ;;  %v888_v38 = vld [vmem:[#allocation10 + $0x20] sm:$0xf]  ;;  %v1073_v43 = vld [vmem:[#allocation10 + $0x24] sm:$0xf0] }
  0x2f   :  { %542 = vmatpush.bf16.msra.mxu1 %v977_v6  ;;  %v952_v44 = vld [vmem:[#allocation10 + $0xa0] sm:$0xf]  ;;  %v1089_v45 = vld [vmem:[#allocation10 + $0xa4] sm:$0xf0]  ;;  %v965_v48 = vor.u32 %v1090_v36, %v962_v37  ;;  %v1072_v49 = vld [vmem:[#allocation10 + $0x24] sm:$0xf] }
  0x30   :  { %530 = vmatpush.bf16.msra.mxu0 %v905_v17  ;;  %v890_v50 = vld [vmem:[#allocation10 + $0x28] sm:$0xf0]  ;;  %v1088_v51 = vld [vmem:[#allocation10 + $0xa4] sm:$0xf]  ;;  %v953_v56 = vor.u32 %v1089_v45, %v952_v44  ;;  %v1071_v59 = vld [vmem:[#allocation10 + $0x14] sm:$0xf0] }
  0x31   :  { %v893_v57 = vor.u32 %v1072_v49, %v890_v50  ;;  %v944_v60 = vld [vmem:[#allocation10 + $0x90] sm:$0xf]  ;;  %v882_v0 = vld [vmem:[#allocation10 + $0x18] sm:$0xf0]  ;;  %v1086_v1 = vld [vmem:[#allocation10 + $0x94] sm:$0xf] }
  0x32   :  { %554 = vmatpush.bf16.msra.mxu2 %v925_v55  ;;  %567 = vmatpush.bf16.msra.mxu3 %v989_v58  ;;  %v889_v55 = vor.u32 %v1073_v43, %v888_v38  ;;  %v880_v58 = vld [vmem:[#allocation10 + $0x10] sm:$0xf]  ;;  %v946_v2 = vld [vmem:[#allocation10 + $0x98] sm:$0xf0]  ;;  %v872_v8 = vld [vmem:[#allocation10] sm:$0xf] }
  0x33   :  { %543 = vmatpush.bf16.msra.mxu1 %v969_v21  ;;  %v1069_v9 = vld [vmem:[#allocation10 + $0x4] sm:$0xf0]  ;;  %v936_v10 = vld [vmem:[#allocation10 + $0x80] sm:$0xf]  ;;  %v1068_v13 = vld [vmem:[#allocation10 + $0x4] sm:$0xf] }
  0x34   :  { %531 = vmatpush.bf16.msra.mxu0 %v897_v35  ;;  %v1085_v12 = vld [vmem:[#allocation10 + $0x84] sm:$0xf0]  ;;  %v874_v14 = vld [vmem:[#allocation10 + $0x8] sm:$0xf0]  ;;  %v1084_v17 = vld [vmem:[#allocation10 + $0x84] sm:$0xf] }
  0x35   :  { %866 = vmatmul.msk.bf16.vlgmr.msrb.gmra.mxu2 %vm191_vm4, %v123_v27  ;;  %867 = vmatmul.msk.bf16.vlgmr.msrb.gmra.mxu3 %vm191_vm4, %v123_v27  ;;  %v938_v18 = vld [vmem:[#allocation10 + $0x88] sm:$0xf0]  ;;  %v877_v24 = vor.u32 %v1068_v13, %v874_v14  ;;  %s833_s21 = sshll.u32 %s1326_s20, 4  ;;  %s835_s23 = sshll.u32 %s1500_s9, 4  ;;  %s834_s21 = int_to_ptr.vmem [resolvable:$true] %s833_s21  ;;  %s836_s23 = int_to_ptr.hbm [resolvable:$true] %s835_s23 }
  0x36   :  { %555 = vmatpush.bf16.msra.mxu2 %v917_v7  ;;  %568 = vmatpush.bf16.msra.mxu3 %v981_v11  ;;  %v949_v11 = vor.u32 %v1086_v1, %v946_v2 }
  0x38   :  { %532 = vmatpush.bf16.msra.mxu0 %v889_v55 }
  0x3a   :  { %556 = vmatpush.bf16.msra.mxu2 %v909_v22 }
  0xa8   :  { %v156_v28 = vpop.f32.mrf.mxu2  ;;  %v169_v29 = vpop.f32.mrf.mxu3 }
  0xb0   :  { %v158_v30 = vpop.f32.mrf.mxu2  ;;  %v171_v31 = vpop.f32.mrf.mxu3 }
  0xb1   :  { %v1091_v30 = vld [vmem:[#allocation10 + $0xb4] sm:$0xf0]  ;;  %v1074_v31 = vld [vmem:[#allocation10 + $0x34] sm:$0xf] }
  0xb2   :  { %v901_v42 = vor.u32 %v1074_v31, %v898_v32 }
  0xb4   :  { %557 = vmatpush.bf16.msra.mxu2 %v901_v42 }
  0xb8   :  { %v214_v62 = vpop.f32.mrf.mxu2  ;;  %v227_v63 = vpop.f32.mrf.mxu3  ;;  %558 = vmatpush.bf16.msra.mxu2 %v893_v57 }
  0xb9   :  { %v215_v4 = vadd.f32 %v214_v62, %v156_v28  ;;  %v228_v5 = vadd.f32 %v227_v63, %v169_v29  ;;  %v973_v28 = vor.u32 %v1092_v20, %v970_v23  ;;  %v960_v29 = vld [vmem:[#allocation10 + $0xb0] sm:$0xf]  ;;  %v1087_v62 = vld [vmem:[#allocation10 + $0x94] sm:$0xf0]  ;;  %v1070_v63 = vld [vmem:[#allocation10 + $0x14] sm:$0xf]  ;;  %v873_v20 = vor.u32 %v1069_v9, %v872_v8 }
  0xba   :  { %v961_v41 = vor.u32 %v1091_v30, %v960_v29  ;;  %v945_v6 = vor.u32 %v1087_v62, %v944_v60  ;;  %v885_v7 = vor.u32 %v1070_v63, %v882_v0  ;;  %v937_v23 = vor.u32 %v1085_v12, %v936_v10 }
  0xbb   :  { %v1398_v15 = vadd.f32 %v233_v52, %v215_v4  ;;  %v1400_v16 = vadd.f32 %v234_v53, %v228_v5  ;;  %569 = vmatpush.bf16.msra.mxu3 %v973_v28  ;;  %v954_v52 = vld [vmem:[#allocation10 + $0xa8] sm:$0xf0]  ;;  %v881_v5 = vor.u32 %v1071_v59, %v880_v58  ;;  %v941_v28 = vor.u32 %v1084_v17, %v938_v18 }
  0xbc   :  { %544 = vmatpush.bf16.msra.mxu1 %v961_v41  ;;  %v957_v61 = vor.u32 %v1088_v51, %v954_v52  ;;  %559 = vmatpush.bf16.msra.mxu2 %v885_v7 }
  0xbd   :  { %v1403_v26 = vmul.f32 0.70710677, %v1398_v15  ;;  %v1406_v27 = vmul.f32 0.70710677, %v1400_v16  ;;  %533 = vmatpush.bf16.msra.mxu0 %v881_v5 }
  0xbf   :  { %v243_v33 = vmul.f32 %v1403_v26, %v1403_v26  ;;  %v283_v34 = vmul.f32 %v1406_v27, %v1406_v27  ;;  %570 = vmatpush.bf16.msra.mxu3 %v965_v48 }
  0xc0   :  { %v216_v39 = vpop.f32.mrf.mxu2  ;;  %v229_v40 = vpop.f32.mrf.mxu3  ;;  %545 = vmatpush.bf16.msra.mxu1 %v953_v56  ;;  %560 = vmatpush.bf16.msra.mxu2 %v877_v24 }
  0xc1   :  { %v1412_v46 = vmin.f32 %v243_v33, 16.0  ;;  %v1414_v47 = vmin.f32 %v283_v34, 16.0  ;;  %534 = vmatpush.bf16.msra.mxu0 %v873_v20 }
  0xc3   :  { %v245_v53 = vmul.f32 2.1237322e-06, %v1412_v46  ;;  %v285_v54 = vmul.f32 2.1237322e-06, %v1414_v47  ;;  %571 = vmatpush.bf16.msra.mxu3 %v957_v61  ;;  %v256_v19 = vmul.f32 3.8918573e-05, %v1412_v46 }
  0xc4   :  { %v296_v21 = vmul.f32 3.8918573e-05, %v1414_v47  ;;  %546 = vmatpush.bf16.msra.mxu1 %v945_v6 }
  0xc5   :  { %v246_v3 = vadd.f32 0.00028619796, %v245_v53  ;;  %v286_v4 = vadd.f32 0.00028619796, %v285_v54  ;;  %v257_v25 = vadd.f32 0.001143296, %v256_v19 }
  0xc6   :  { %v297_v29 = vadd.f32 0.001143296, %v296_v21 }
  0xc7   :  { %v247_v22 = vmul.f32 %v246_v3, %v1412_v46  ;;  %572 = vmatpush.bf16.msra.mxu3 %v949_v11  ;;  %v287_v30 = vmul.f32 %v286_v4, %v1414_v47  ;;  %v258_v31 = vmul.f32 %v257_v25, %v1412_v46  ;;  %v239_v25 = vmul.f32 0.5, %v1398_v15 }
  0xc8   :  { %v298_v32 = vmul.f32 %v297_v29, %v1414_v47  ;;  %547 = vmatpush.bf16.msra.mxu1 %v937_v23  ;;  %v240_v29 = vmul.f32 0.5, %v1400_v16 }
  0xc9   :  { %v248_v33 = vadd.f32 0.0036580483, %v247_v22  ;;  %v259_v34 = vadd.f32 0.014752088, %v258_v31  ;;  %v288_v36 = vadd.f32 0.0036580483, %v287_v30 }
  0xca   :  { %v299_v35 = vadd.f32 0.014752088, %v298_v32 }
  0xcb   :  { %573 = vmatpush.bf16.msra.mxu3 %v941_v28  ;;  %v260_v37 = vmul.f32 %v259_v34, %v1412_v46  ;;  %v249_v39 = vmul.f32 %v248_v33, %v1412_v46  ;;  %v289_v42 = vmul.f32 %v288_v36, %v1414_v47 }
  0xcc   :  { %v300_v38 = vmul.f32 %v299_v35, %v1414_v47  ;;  %v1107_v35 = vld [vmem:[#allocation11 + $0x38] sm:$0xff] }
  0xcd   :  { %v261_v40 = vadd.f32 0.112945676, %v260_v37  ;;  %v250_v45 = vadd.f32 0.05243302, %v249_v39  ;;  %v290_v50 = vadd.f32 0.05243302, %v289_v42  ;;  %801 = vmatpush.bf16.msrb.mxu0 %v1107_v35 }
  0xce   :  { %v301_v41 = vadd.f32 0.112945676, %v300_v38  ;;  %v1106_v39 = vld [vmem:[#allocation11 + $0x30] sm:$0xff] }
  0xcf   :  { %v262_v43 = vmul.f32 %v261_v40, %v1412_v46  ;;  %v251_v53 = vmul.f32 %v250_v45, %v1412_v46  ;;  %v291_v56 = vmul.f32 %v290_v50, %v1414_v47 }
  0xd0   :  { %v302_v44 = vmul.f32 %v301_v41, %v1414_v47  ;;  %v1115_v41 = vld [vmem:[#allocation11 + $0x78] sm:$0xff] }
  0xd1   :  { %v263_v48 = vadd.f32 0.4994258, %v262_v43  ;;  %v252_v57 = vadd.f32 0.18741608, %v251_v53  ;;  %v292_v58 = vadd.f32 0.18741608, %v291_v56  ;;  %802 = vmatpush.bf16.msrb.mxu0 %v1106_v39  ;;  %814 = vmatpush.bf16.msrb.mxu1 %v1115_v41 }
  0xd2   :  { %v303_v49 = vadd.f32 0.4994258, %v302_v44  ;;  %v1114_v53 = vld [vmem:[#allocation11 + $0x70] sm:$0xff]  ;;  %v1104_v56 = vld [vmem:[#allocation11 + $0x20] sm:$0xff] }
  0xd3   :  { %v264_v51 = vmul.f32 %v263_v48, %v1412_v46  ;;  %v253_v60 = vmul.f32 %v252_v57, %v1412_v46  ;;  %v293_v63 = vmul.f32 %v292_v58, %v1414_v47  ;;  %v1105_v48 = vld [vmem:[#allocation11 + $0x28] sm:$0xff] }
  0xd4   :  { %v304_v52 = vmul.f32 %v303_v49, %v1414_v47 }
  0xd5   :  { %v265_v54 = vadd.f32 1.0, %v264_v51  ;;  %v254_v2 = vadd.f32 1.1283791, %v253_v60  ;;  %v294_v8 = vadd.f32 1.1283791, %v293_v63  ;;  %803 = vmatpush.bf16.msrb.mxu0 %v1105_v48  ;;  %815 = vmatpush.bf16.msrb.mxu1 %v1114_v53  ;;  %v1113_v60 = vld [vmem:[#allocation11 + $0x68] sm:$0xff] }
  0xd6   :  { %v305_v55 = vadd.f32 1.0, %v304_v52 }
  0xd7   :  { %1129 = vrcp.f32 %v265_v54  ;;  %v277_v3 = vand.u32 2147483648, %v265_v54  ;;  %v275_v6 = vand.u32 2147483647, %v265_v54  ;;  %vm271_vm7 = vweird.f32 %v265_v54 }
  0xd8   :  { %1131 = vrcp.f32 %v305_v55  ;;  %v317_v7 = vand.u32 2147483648, %v305_v55  ;;  %v315_v10 = vand.u32 2147483647, %v305_v55  ;;  %vm311_vm9 = vweird.f32 %v305_v55 }
  0xd9   :  { %v278_v46 = vor.u32 1.1754944e-38, %v277_v3  ;;  %v255_v47 = vmul.f32 %v254_v2, %v1403_v26  ;;  %vm276_vm10 = vcmp.eq.f32.partialorder %v275_v6, 8.507059e+37  ;;  %v295_v17 = vmul.f32 %v294_v8, %v1406_v27  ;;  %v361_v27 = vld [vmem:[%s1497_s6] sm:$0x3]  ;;  %804 = vmatpush.bf16.msrb.mxu0 %v1104_v56  ;;  %816 = vmatpush.bf16.msrb.mxu1 %v1113_v60  ;;  %v1103_v2 = vld [vmem:[#allocation11 + $0x18] sm:$0xff] }
  0xda   :  { %v318_v14 = vor.u32 1.1754944e-38, %v317_v7  ;;  %vm316_vm12 = vcmp.eq.f32.partialorder %v315_v10, 8.507059e+37  ;;  %v363_v34 = vperm.slane %v361_v27, 0  ;;  %v364_v38 = vperm.slane %v361_v27, 1  ;;  %v1102_v10 = vld [vmem:[#allocation11 + $0x10] sm:$0xff] }
  0xdd   :  { %v1130_v59 = vpop.eup %1129  ;;  %805 = vmatpush.bf16.msrb.mxu0 %v1103_v2 }
  0xde   :  { %v1132_v61 = vpop.eup %1131  ;;  %v267_v62 = vmul.f32 %v1130_v59, %v265_v54  ;;  %vm272_vm5 = vweird.f32 %v1130_v59 }
  0xdf   :  { %v307_v0 = vmul.f32 %v1132_v61, %v305_v55  ;;  %vm312_vm6 = vweird.f32 %v1132_v61  ;;  %vm273_vm8 = vmor %vm271_vm7, %vm272_vm5 }
  0xe0   :  { %v268_v1 = vsub.f32 1.0, %v267_v62  ;;  %vm313_vm11 = vmor %vm311_vm9, %vm312_vm6 }
  0xe1   :  { %v308_v4 = vsub.f32 1.0, %v307_v0  ;;  %806 = vmatpush.bf16.msrb.mxu0 %v1102_v10 }
  0xe2   :  { %v269_v5 = vmul.f32 %v1130_v59, %v268_v1 }
  0xe3   :  { %v309_v9 = vmul.f32 %v1132_v61, %v308_v4 }
  0xe4   :  { %v270_v11 = vadd.f32 %v1130_v59, %v269_v5  ;;  %v1112_v5 = vld [vmem:[#allocation11 + $0x60] sm:$0xff] }
  0xe5   :  { %v310_v12 = vadd.f32 %v1132_v61, %v309_v9  ;;  %817 = vmatpush.bf16.msrb.mxu1 %v1112_v5 }
  0xe6   :  { %v274_v13 = vsel %vm273_vm8, %v1130_v59, %v270_v11 }
  0xe7   :  { %v279_v18 = vsel %vm276_vm10, %v278_v46, %v274_v13  ;;  %v314_v19 = vsel %vm313_vm11, %v1132_v61, %v310_v12 }
  0xe8   :  { %v280_v20 = vmul.f32 %v279_v18, %v255_v47  ;;  %v319_v21 = vsel %vm316_vm12, %v318_v14, %v314_v19  ;;  %v1111_v47 = vld [vmem:[#allocation11 + $0x58] sm:$0xff]  ;;  %v1101_v19 = vld [vmem:[#allocation11 + $0x8] sm:$0xff] }
  0xe9   :  { %v320_v22 = vmul.f32 %v319_v21, %v295_v17  ;;  %818 = vmatpush.bf16.msrb.mxu1 %v1111_v47  ;;  %807 = vmatpush.bf16.msrb.mxu0 %v1101_v19  ;;  %v1128_v19 = vld [vmem:[%s1499_s8] ss:$0 sm:$0xff] }
  0xea   :  { %v868_v23 = vclamps-f32 %v280_v20, 1.0  ;;  %v1110_v20 = vld [vmem:[#allocation11 + $0x50] sm:$0xff] }
  0xeb   :  { %v869_v24 = vclamps-f32 %v320_v22, 1.0 }
  0xec   :  { %v323_v28 = vadd.f32 1.0, %v868_v23 }
  0xed   :  { %v324_v26 = vadd.f32 1.0, %v869_v24  ;;  %v1100_v24 = vld [vmem:[#allocation11] sm:$0xff]  ;;  %819 = vmatpush.bf16.msrb.mxu1 %v1110_v20 }
  0xee   :  { %v325_v30 = vmul.f32 %v323_v28, %v239_v25  ;;  %808 = vmatpush.bf16.msrb.mxu0 %v1100_v24 }
  0xef   :  { %v326_v31 = vmul.f32 %v324_v26, %v240_v29  ;;  %v1109_v26 = vld [vmem:[#allocation11 + $0x48] sm:$0xff] }
  0xf0   :  { %v327_v32 = vpack.c.bf16 %v325_v30, %v325_v30 }
  0xf1   :  { %v328_v33 = vpack.c.bf16 %v326_v31, %v326_v31  ;;  %820 = vmatpush.bf16.msrb.mxu1 %v1109_v26 }
  0xf2   :  { %535 = vmatmul.bf16.vlgmr.msra.gmra.mxu0 %v327_v32  ;;  %561 = vmatmul.bf16.vlgmr.msra.gmra.mxu2 %v327_v32 }
  0xf3   :  { %548 = vmatmul.bf16.vlgmr.msra.gmra.mxu1 %v328_v33  ;;  %574 = vmatmul.bf16.vlgmr.msra.gmra.mxu3 %v328_v33 }
 0x16f   :  { %v536_v36 = vpop.f32.mrf.mxu0 }
 0x170   :  { %v537_v15 = vadd.f32 %v536_v36, %v363_v34  ;;  %v549_v37 = vpop.f32.mrf.mxu1  ;;  %v1108_v34 = vld [vmem:[#allocation11 + $0x40] sm:$0xff] }
 0x171   :  { %821 = vmatpush.bf16.msrb.mxu1 %v1108_v34 }
 0x172   :  { %v1443_v16 = vadd.f32 %v549_v37, %v537_v15 }
 0x174   :  { %v1446_v40 = vmul.f32 0.70710677, %v1443_v16 }
 0x175   :  { %v562_v42 = vpop.f32.mrf.mxu2 }
 0x176   :  { %v583_v43 = vmul.f32 %v1446_v40, %v1446_v40  ;;  %v563_v44 = vadd.f32 %v562_v42, %v364_v38  ;;  %v575_v45 = vpop.f32.mrf.mxu3 }
 0x177   :  { %v538_v49 = vpop.f32.mrf.mxu0 }
 0x178   :  { %v1450_v50 = vmin.f32 %v583_v43, 16.0  ;;  %v1452_v51 = vadd.f32 %v575_v45, %v563_v44  ;;  %v551_v52 = vpop.f32.mrf.mxu1 }
 0x17a   :  { %v585_v54 = vmul.f32 2.1237322e-06, %v1450_v50  ;;  %v596_v55 = vmul.f32 3.8918573e-05, %v1450_v50  ;;  %v1457_v57 = vmul.f32 0.70710677, %v1452_v51 }
 0x17c   :  { %v586_v58 = vadd.f32 0.00028619796, %v585_v54  ;;  %v597_v59 = vadd.f32 0.001143296, %v596_v55  ;;  %v623_v61 = vmul.f32 %v1457_v57, %v1457_v57 }
 0x17d   :  { %v564_v62 = vpop.f32.mrf.mxu2 }
 0x17e   :  { %v587_v63 = vmul.f32 %v586_v58, %v1450_v50  ;;  %v598_v0 = vmul.f32 %v597_v59, %v1450_v50  ;;  %v577_v1 = vpop.f32.mrf.mxu3  ;;  %v1463_v3 = vmin.f32 %v623_v61, 16.0 }
 0x180   :  { %v599_v4 = vadd.f32 0.014752088, %v598_v0  ;;  %v588_v6 = vadd.f32 0.0036580483, %v587_v63  ;;  %v625_v7 = vmul.f32 2.1237322e-06, %v1463_v3 }
 0x181   :  { %v636_v8 = vmul.f32 3.8918573e-05, %v1463_v3 }
 0x182   :  { %v600_v9 = vmul.f32 %v599_v4, %v1450_v50  ;;  %v626_v11 = vadd.f32 0.00028619796, %v625_v7  ;;  %v589_v13 = vmul.f32 %v588_v6, %v1450_v50  ;;  %v579_v7 = vmul.f32 0.5, %v1443_v16 }
 0x183   :  { %v637_v46 = vadd.f32 0.001143296, %v636_v8 }
 0x184   :  { %v601_v12 = vadd.f32 0.112945676, %v600_v9  ;;  %v627_v14 = vmul.f32 %v626_v11, %v1463_v3  ;;  %v590_v25 = vadd.f32 0.05243302, %v589_v13  ;;  %v580_v13 = vmul.f32 0.5, %v1452_v51 }
 0x185   :  { %v638_v17 = vmul.f32 %v637_v46, %v1463_v3 }
 0x186   :  { %v602_v18 = vmul.f32 %v601_v12, %v1450_v50  ;;  %v628_v23 = vadd.f32 0.0036580483, %v627_v14  ;;  %v591_v33 = vmul.f32 %v590_v25, %v1450_v50 }
 0x187   :  { %v639_v21 = vadd.f32 0.014752088, %v638_v17 }
 0x188   :  { %v603_v22 = vadd.f32 0.4994258, %v602_v18  ;;  %v629_v32 = vmul.f32 %v628_v23, %v1463_v3  ;;  %v592_v15 = vadd.f32 0.18741608, %v591_v33 }
 0x189   :  { %v640_v28 = vmul.f32 %v639_v21, %v1463_v3 }
 0x18a   :  { %v604_v29 = vmul.f32 %v603_v22, %v1450_v50  ;;  %v630_v36 = vadd.f32 0.05243302, %v629_v32  ;;  %v593_v42 = vmul.f32 %v592_v15, %v1450_v50 }
 0x18b   :  { %v641_v30 = vadd.f32 0.112945676, %v640_v28 }
 0x18c   :  { %v605_v31 = vadd.f32 1.0, %v604_v29  ;;  %v631_v41 = vmul.f32 %v630_v36, %v1463_v3  ;;  %v594_v49 = vadd.f32 1.1283791, %v593_v42 }
 0x18d   :  { %v642_v27 = vmul.f32 %v641_v30, %v1463_v3 }
 0x18e   :  { %1133 = vrcp.f32 %v605_v31  ;;  %v617_v45 = vand.u32 2147483648, %v605_v31  ;;  %v632_v48 = vadd.f32 0.18741608, %v631_v41  ;;  %v615_v53 = vand.u32 2147483647, %v605_v31 }
 0x18f   :  { %v643_v35 = vadd.f32 0.4994258, %v642_v27  ;;  %vm611_vm14 = vweird.f32 %v605_v31  ;;  %v595_v60 = vmul.f32 %v594_v49, %v1446_v40 }
 0x190   :  { %v618_v56 = vor.u32 1.1754944e-38, %v617_v45  ;;  %v633_v58 = vmul.f32 %v632_v48, %v1463_v3  ;;  %vm616_vm0 = vcmp.eq.f32.partialorder %v615_v53, 8.507059e+37 }
 0x191   :  { %v644_v37 = vmul.f32 %v643_v35, %v1463_v3 }
 0x192   :  { %v634_v1 = vadd.f32 1.1283791, %v633_v58 }
 0x193   :  { %v645_v38 = vadd.f32 1.0, %v644_v37 }
 0x194   :  { %v1134_v39 = vpop.eup %1133  ;;  %v635_v40 = vmul.f32 %v634_v1, %v1457_v57 }
 0x195   :  { %v607_v43 = vmul.f32 %v1134_v39, %v605_v31  ;;  %1135 = vrcp.f32 %v645_v38  ;;  %vm612_vm13 = vweird.f32 %v1134_v39  ;;  %v657_v0 = vand.u32 2147483648, %v645_v38 }
 0x196   :  { %vm613_vm15 = vmor %vm611_vm14, %vm612_vm13  ;;  %v655_v4 = vand.u32 2147483647, %v645_v38  ;;  %vm651_vm2 = vweird.f32 %v645_v38 }
 0x197   :  { %v608_v44 = vsub.f32 1.0, %v607_v43  ;;  %v658_v3 = vor.u32 1.1754944e-38, %v657_v0 }
 0x198   :  { %vm656_vm4 = vcmp.eq.f32.partialorder %v655_v4, 8.507059e+37 }
 0x199   :  { %v609_v52 = vmul.f32 %v1134_v39, %v608_v44 }
 0x19b   :  { %v1136_v54 = vpop.eup %1135  ;;  %v610_v55 = vadd.f32 %v1134_v39, %v609_v52 }
 0x19c   :  { %v647_v59 = vmul.f32 %v1136_v54, %v645_v38  ;;  %vm652_vm1 = vweird.f32 %v1136_v54 }
 0x19d   :  { %v614_v50 = vsel %vm613_vm15, %v1134_v39, %v610_v55  ;;  %vm653_vm3 = vmor %vm651_vm2, %vm652_vm1 }
 0x19e   :  { %v619_v61 = vsel %vm616_vm0, %v618_v56, %v614_v50  ;;  %v648_v62 = vsub.f32 1.0, %v647_v59 }
 0x19f   :  { %v620_v63 = vmul.f32 %v619_v61, %v595_v60 }
 0x1a0   :  { %v649_v2 = vmul.f32 %v1136_v54, %v648_v62 }
 0x1a1   :  { %v998_v5 = vclamps-f32 %v620_v63, 1.0 }
 0x1a2   :  { %v650_v6 = vadd.f32 %v1136_v54, %v649_v2 }
 0x1a3   :  { %v663_v8 = vadd.f32 1.0, %v998_v5 }
 0x1a4   :  { %v654_v9 = vsel %vm653_vm3, %v1136_v54, %v650_v6 }
 0x1a5   :  { %v659_v10 = vsel %vm656_vm4, %v658_v3, %v654_v9  ;;  %v665_v11 = vmul.f32 %v663_v8, %v579_v7 }
 0x1a6   :  { %v660_v46 = vmul.f32 %v659_v10, %v635_v40 }
 0x1a7   :  { %v667_v12 = vpack.c.bf16 %v665_v11, %v665_v11 }
 0x1a8   :  { %v999_v47 = vclamps-f32 %v660_v46, 1.0 }
 0x1a9   :  { %809 = vmatmul.bf16.vlgmr.msrb.gmra.mxu0 %v667_v12 }
 0x1aa   :  { %v664_v14 = vadd.f32 1.0, %v999_v47 }
 0x1ac   :  { %v666_v17 = vmul.f32 %v664_v14, %v580_v13 }
 0x1ae   :  { %v668_v18 = vpack.c.bf16 %v666_v17, %v666_v17 }
 0x1b0   :  { %822 = vmatmul.bf16.vlgmr.msrb.gmra.mxu1 %v668_v18 }
 0x226   :  { %v810_v16 = vpop.f32.mrf.mxu0 }
 0x227   :  { %v811_v57 = vadd.f32 %v1128_v19, %v810_v16 }
 0x22d   :  { %v823_v20 = vpop.f32.mrf.mxu1 }
 0x22e   :  { %v824_v21 = vadd.f32 %v823_v20, %v811_v57  ;;  %v812_v22 = vpop.f32.mrf.mxu0 }
 0x230   :  { %827 = vst [vmem:[#allocation13] sm:$0xff] %v824_v21 }
 0x231   :  { %838 = dma.vmem_to_hbm [thread:$0]  %s834_s21, 128, %s836_s23, [#allocation4]  }
 0x235   :  { %v825_v51 = vpop.f32.mrf.mxu1 }
 0x236   :  { %1313 = dma.done.wait [#allocation4], 128  }
 0x237   :  { %1314 = vsyncadd [#allocation4], 4294967168 }
 0x238   :  { %843 = vsyncpa [#allocation3], 1 }
 0x239   :  { %844 = vsyncpa [#allocation6], 1 }
 0x23a   :  { %845 = vsyncpa [#allocation9], 1 }
 0x23b   :  { %846 = vsyncpa [#allocation12], 1 }
 0x23c   :  { %847 = vsyncpa [#allocation4], 1 }

</bundles_post_ra>
